<compile_context>
chip_gen: v7x
topology: tpu7x:2x2x1
jax: 0.10.0
libtpu: 0.0.40
codegen_flags: <defaults>
</compile_context>

<pallas_src>
import jax
import jax.numpy as jnp
from jax.experimental import pallas as pl
from jax.experimental.pallas import tpu as pltpu


def fold_bias_into_pe(pe, b):
    """One-time parameter transform (do at init, NOT per call): pe' = pe + b_in.

    out = x @ W + b + pe[t] == x @ W + (pe + b)[t], so folding the bias into the
    positional table drops one input stream / BlockSpec and one broadcast add
    from the kernel epilogue.
    """
    return pe + b[None, :]


def _proj_pe_kernel(x_ref, w_ref, pe_ref, o_ref):
    # x_ref : (rows, K)      activation row-block
    # w_ref : (K, Dm)        projection weight (single-buffered, VMEM-resident)
    # pe_ref: (pe_rows, Dm)  positional rows; pe_rows == rows, or pe_rows == T when
    #                        the row-block spans whole sequences (rows = g*T)
    # o_ref : (rows, Dm)     lane-dense output block (Dm is a multiple of 128 here)
    acc = jnp.dot(x_ref[...], w_ref[...], preferred_element_type=jnp.float32)
    pe = pe_ref[...].astype(jnp.float32)
    reps = acc.shape[0] // pe.shape[0]
    if reps > 1:  # static (trace-time) branch: block spans `reps` full sequences
        pe = jnp.tile(pe, (reps, 1))
    o_ref[...] = (acc + pe).astype(o_ref.dtype)


def _choose_tile_rows(B, T, K, Dm, itemsize, row_mult, vmem_limit_bytes):
    """Largest legal row-block whose tiles fit the VMEM budget.

    Footprint model: 2*rows*(K + Dm)  (x + out, double-buffered)
                   + 2*min(rows, T)*Dm (pe, double-buffered)
                   + K*Dm              (weight, Buffered(1))
    all * itemsize, kept under ~3/4 of the scoped vmem limit.  Prefers a tile that
    leaves >= 2 grid steps (feeds both TensorCores on v7x).
    """
    budget = (3 * vmem_limit_bytes) // 4 - K * Dm * itemsize

    def tile_bytes(rows):
        return (2 * rows * (K + Dm) + 2 * min(rows, T) * Dm) * itemsize

    cands = set()
    for d in range(row_mult, T + 1, row_mult):   # divisors of T (pe tiled along T)
        if T % d == 0:
            cands.add(d)
    for g in range(1, B + 1):                    # whole-sequence multiples (pe reused)
        if B % g == 0:
            cands.add(g * T)
    cands = sorted(cands)

    fitting = [c for c in cands if tile_bytes(c) <= budget]
    if not fitting:
        fitting = cands[:1]   # smallest legal tile; vmem_limit flags genuine OOM
    multi_step = [c for c in fitting if (B * T) // c >= 2]
    return max(multi_step) if multi_step else max(fitting)


def input_proj_with_pos_encoding(x, w, pe_b, *, tile_rows=None, io_dtype=None,
                                 vmem_limit_bytes=32 * 1024 * 1024):
    """x: (B, T, K), w: (K, Dm) (pre-transposed nn.Linear weight),
    pe_b: (max_len, Dm) = pe + bias (see fold_bias_into_pe) -> (B, T, Dm).

    io_dtype: optional narrower dtype (e.g. jnp.bfloat16) for the kernel's HBM
    streams; accumulation and the +pe epilogue stay in f32.
    """
    B, T, K = x.shape
    Kw, Dm = w.shape
    assert Kw == K, (Kw, K)
    max_len, Dpe = pe_b.shape
    assert Dpe == Dm and max_len >= T, (pe_b.shape, T, Dm)

    out_dtype = io_dtype if io_dtype is not None else x.dtype
    if io_dtype is not None:
        x = x.astype(io_dtype)
        w = w.astype(io_dtype)
        pe_b = pe_b.astype(io_dtype)

    itemsize = jnp.dtype(x.dtype).itemsize
    row_mult = max(8, 8 * (4 // itemsize))   # 8 rows for f32, 16 for bf16
    cparams = pltpu.CompilerParams(
        dimension_semantics=("parallel",),
        vmem_limit_bytes=vmem_limit_bytes,
    )
    w_spec_const = lambda i: (0, 0)

    if T % row_mult == 0:
        # ---- fast path: batch folded into the matmul M dimension ------------------
        if tile_rows is None:
            tile_rows = _choose_tile_rows(B, T, K, Dm, itemsize, row_mult,
                                          vmem_limit_bytes)
        R = B * T
        assert tile_rows % row_mult == 0, (tile_rows, row_mult)
        assert R % tile_rows == 0, (R, tile_rows)
        assert (T % tile_rows == 0) or (tile_rows % T == 0), (T, tile_rows)

        pe_rows = min(tile_rows, T)
        n_pe_blocks = T // pe_rows
        if n_pe_blocks == 1:
            pe_index = lambda i: (0, 0)
        else:
            pe_index = lambda i: (i % n_pe_blocks, 0)

        out = pl.pallas_call(
            _proj_pe_kernel,
            out_shape=jax.ShapeDtypeStruct((R, Dm), out_dtype),
            grid_spec=pl.GridSpec(
                grid=(R // tile_rows,),
                in_specs=[
                    # activation row-block (M dimension of the matmul)
                    pl.BlockSpec((tile_rows, K), lambda i: (i, 0)),
                    # full weight, constant index, single-buffered (DMA'd once)
                    pl.BlockSpec((K, Dm), w_spec_const,
                                 pipeline_mode=pl.Buffered(1)),
                    # pe(+bias) rows; full table passed, only needed rows fetched
                    pl.BlockSpec((pe_rows, Dm), pe_index),
                ],
                out_specs=pl.BlockSpec((tile_rows, Dm), lambda i: (i, 0)),
            ),
            compiler_params=cparams,
        )(x.reshape(R, K), w, pe_b)
        return out.reshape(B, T, Dm)

    # ---- fallback: T has no legal row tiling -> per-batch full-dim blocks ---------
    # Full-dim blocks are always layout-legal regardless of T.  pe is sliced once in
    # the wrapper so its block equals its full dims.
    # TODO(synk): for very large awkward T, pad T to a multiple of 8 upstream instead
    # of loading a full (T, K)/(T, Dm) block per batch element.
    pe_T = pe_b[:T]
    return pl.pallas_call(
        _proj_pe_kernel,
        out_shape=jax.ShapeDtypeStruct((B, T, Dm), out_dtype),
        grid_spec=pl.GridSpec(
            grid=(B,),
            in_specs=[
                pl.BlockSpec((pl.Squeezed(), T, K), lambda b: (b, 0, 0)),
                pl.BlockSpec((K, Dm), w_spec_const, pipeline_mode=pl.Buffered(1)),
                pl.BlockSpec((T, Dm), lambda b: (0, 0)),
            ],
            out_specs=pl.BlockSpec((pl.Squeezed(), T, Dm), lambda b: (b, 0, 0)),
        ),
        compiler_params=cparams,
    )(x, w, pe_T)


if __name__ == "__main__":
    key = jax.random.PRNGKey(0)
    k_x, k_w, k_b, k_pe, k_x2 = jax.random.split(key, 5)

    # Shapes implied by the module: x is (B, T, num_hands, hand_dim),
    # input_dim = num_hands * hand_dim, model_dim lane-dense (multiple of 128).
    B, T, num_hands, hand_dim = 2, 8, 2, 32
    input_dim = num_hands * hand_dim          # 64
    model_dim = 256                           # nn.Linear(input_dim, model_dim)
    max_len = 64                              # small stand-in for max_len=5000

    x4 = jax.random.normal(k_x, (B, T, num_hands, hand_dim), dtype=jnp.float32)
    # PyTorch nn.Linear stores weight as (out, in); keep it pre-transposed (in, out).
    w_in = jax.random.normal(k_w, (input_dim, model_dim), dtype=jnp.float32) * 0.125
    b_in = jax.random.normal(k_b, (model_dim,), dtype=jnp.float32) * 0.125
    pe = jax.random.normal(k_pe, (max_len, model_dim), dtype=jnp.float32)

    x = x4.reshape(B, T, -1)                  # == x.view(B, T, -1)
    pe_b = fold_bias_into_pe(pe, b_in)        # one-time parameter transform

    ref = jnp.einsum("btk,kd->btd", x, w_in) + b_in[None, None, :] + pe[:T][None]

    # 1) f32 (module dtype), fast flattened path: T % 8 == 0 -> grid over row blocks.
    out = jax.block_until_ready(input_proj_with_pos_encoding(x, w_in, pe_b))
    assert out.shape == (B, T, model_dim)
    assert jnp.allclose(out, ref, atol=2e-2, rtol=2e-2), (
        f"f32 mismatch, max abs err = {float(jnp.max(jnp.abs(out - ref)))}")

    # 2) f32 with a larger batch: row block spans whole sequences (tile_rows = 2*T),
    #    exercising the in-kernel pe replication path.
    B2 = 4
    x2 = jax.random.normal(k_x2, (B2, T, input_dim), dtype=jnp.float32)
    ref2 = jnp.einsum("btk,kd->btd", x2, w_in) + b_in[None, None, :] + pe[:T][None]
    out2 = jax.block_until_ready(input_proj_with_pos_encoding(x2, w_in, pe_b))
    assert out2.shape == (B2, T, model_dim)
    assert jnp.allclose(out2, ref2, atol=2e-2, rtol=2e-2), (
        f"f32/B=4 mismatch, max abs err = {float(jnp.max(jnp.abs(out2 - ref2)))}")

    # 3) bf16 I/O variant (halves HBM traffic on this memory-bound kernel).  T=8 is
    #    not a multiple of the bf16 row packing (16), so this exercises the
    #    full-dim-block per-batch fallback path.
    out_bf16 = jax.block_until_ready(
        input_proj_with_pos_encoding(x, w_in, pe_b, io_dtype=jnp.bfloat16))
    assert out_bf16.shape == (B, T, model_dim) and out_bf16.dtype == jnp.bfloat16
    err_bf16 = float(jnp.max(jnp.abs(out_bf16.astype(jnp.float32) - ref)))
    assert jnp.allclose(out_bf16.astype(jnp.float32), ref, atol=1e-1, rtol=1e-1), (
        f"bf16 mismatch, max abs err = {err_bf16}")

    print("KERNEL_OK")
</pallas_src>

<mosaic_0001>
module attributes {stable_mosaic.version = 11 : i64} {
  func.func @_proj_pe_kernel(%arg0: i32, %arg1: memref<8x64xf32, #tpu.memory_space<vmem>>, %arg2: memref<64x256xf32, #tpu.memory_space<vmem>>, %arg3: memref<8x256xf32, #tpu.memory_space<vmem>>, %arg4: memref<8x256xf32, #tpu.memory_space<vmem>>) attributes {dimension_semantics = [#tpu.dimension_semantics<parallel>], iteration_bounds = array<i64: 2>, scalar_prefetch = 0 : i64, scratch_operands = 0 : i64, tpu.core_type = #tpu.core_type<tc>, window_params = [{transform_indices = @transform_0, window_bounds = array<i64: 8, 64>}, {pipeline_mode = #tpu.pipeline_mode<synchronous>, transform_indices = @transform_1, window_bounds = array<i64: 64, 256>}, {transform_indices = @transform_2, window_bounds = array<i64: 8, 256>}, {transform_indices = @transform_3, window_bounds = array<i64: 8, 256>}]} {
    %c0 = arith.constant 0 : index
    %c0_0 = arith.constant 0 : index
    %0 = vector.load %arg1[%c0, %c0_0] : memref<8x64xf32, #tpu.memory_space<vmem>>, vector<8x64xf32>
    %c0_1 = arith.constant 0 : index
    %c0_2 = arith.constant 0 : index
    %1 = vector.load %arg2[%c0_1, %c0_2] : memref<64x256xf32, #tpu.memory_space<vmem>>, vector<64x256xf32>
    %cst = arith.constant dense<0.000000e+00> : vector<8x256xf32>
    %2 = tpu.matmul %0, %1, %cst {dimension_numbers = #tpu.dot_dimension_numbers<[1], [0], [0], [1], [0, 0, 1, 1], [], []>} : vector<8x64xf32>, vector<64x256xf32>, vector<8x256xf32> -> vector<8x256xf32>
    %c0_3 = arith.constant 0 : index
    %c0_4 = arith.constant 0 : index
    %3 = vector.load %arg3[%c0_3, %c0_4] : memref<8x256xf32, #tpu.memory_space<vmem>>, vector<8x256xf32>
    %4 = arith.addf %2, %3 : vector<8x256xf32>
    %c0_5 = arith.constant 0 : index
    %c0_6 = arith.constant 0 : index
    %5 = vector.load %arg4[%c0_5, %c0_6] : memref<8x256xf32, #tpu.memory_space<vmem>>, vector<8x256xf32>
    tpu.vector_store %arg4[%c0_5, %c0_6], %4 {strides = array<i32>} : memref<8x256xf32, #tpu.memory_space<vmem>>, vector<8x256xf32>,
    return
  }
  func.func @transform_0(%arg0: i32) -> (i32, i32) {
    %c0_i32 = arith.constant 0 : i32
    %c0_i32_0 = arith.constant 0 : i32
    return %arg0, %c0_i32 : i32, i32
  }
  func.func @transform_1(%arg0: i32) -> (i32, i32) {
    %c0_i32 = arith.constant 0 : i32
    %c0_i32_0 = arith.constant 0 : i32
    %c0_i32_1 = arith.constant 0 : i32
    return %c0_i32, %c0_i32_0 : i32, i32
  }
  func.func @transform_2(%arg0: i32) -> (i32, i32) {
    %c0_i32 = arith.constant 0 : i32
    %c0_i32_0 = arith.constant 0 : i32
    %c0_i32_1 = arith.constant 0 : i32
    return %c0_i32, %c0_i32_0 : i32, i32
  }
  func.func @transform_3(%arg0: i32) -> (i32, i32) {
    %c0_i32 = arith.constant 0 : i32
    %c0_i32_0 = arith.constant 0 : i32
    return %arg0, %c0_i32 : i32, i32
  }
}

</mosaic_0001>

<bundles_post_ra>
// kernel: tpu_custom_call.1
= control target key start
LH: loop header
LB: loop body
LE: loop exit
PB: predicated region body
PF: predicated region fallthrough
CT: control target
= control target key end

     0   :  { %8 = vsyncpa [#allocation3], 0  ;;  %s939_s0 = inlined_call_operand.hbm [shape: f32[16,64], index: 0, kind: input, shape index: {}]   ;;  %s940_s1 = inlined_call_operand.hbm [shape: f32[64,256], index: 1, kind: input, shape index: {}]   ;;  %s941_s2 = inlined_call_operand.hbm [shape: f32[64,256], index: 2, kind: input, shape index: {}]   ;;  %s942_s3 = inlined_call_operand.hbm [shape: f32[16,256], index: 3, kind: output, shape index: {}]  }
   0x1   :  { %10 = vsyncpa [#allocation3 + $0x1], 0 }
   0x2   :  { %11 = vsyncpa [#allocation6], 0 }
   0x3   :  { %12 = vsyncpa [#allocation4], 0 }
   0x4   :  { %14 = vsyncpa [#allocation4 + $0x1], 0  ;;  %s703_s12 = smov 0   ;;  %s705_s13 = smov 0  }
   0x5   :  { %s707_s14 = smov 0   ;;  %s709_s15 = smov 0  }
   0x6 LB: > { %s724_s16 = sadd.s32 4294967295, %s674_s15   ;;  %s413_s17 = sadd.s32 4294967294, %s674_s15   ;;  %s674_s15 = sphi %s709_s15, %s962_s15   ;;  %s670_s14 = sphi %s707_s14, %s961_s14   ;;  %s666_s13 = sphi %s705_s13, %s960_s13   ;;  %s662_s12 = sphi %s703_s12, %s959_s12  }
   0x7   : > { %p40_p0 = scmp.ne.s32.totalorder %s666_s13, %s662_s12  ;;  %p943_p1 = scmp.eq.s32.totalorder %s724_s16, 0 }
   0x8   : > { %p112_p3 = scmp.eq.s32.totalorder %s413_s17, 1  ;;  %p414_p5 = scmp.ge.s32.totalorder %s674_s15, 1 }
   0x9   : > { %p733_p4 = por %p943_p1, %p40_p0  ;;  %p119_p7 = scmp.lt.s32.totalorder %s674_s15, 3 }
   0xa   : > { %p738_p6 = por %p112_p3, %p40_p0  ;;  %s676_s21 = smov [#allocation5]  }
   0xb   : > { %s946_s18 = scalar_select %p733_p4, 1, 0 }
   0xc   : > { %s947_s19 = scalar_select %p738_p6, 1, 0 }
   0xd   : > { %p743_p8 = pnand %p414_p5, %p119_p7  ;;  %s131_s22 = sshll.u32 %s676_s21, 4  ;;  %s747_s22 = int_to_ptr.vmem [resolvable:$true] %s131_s22 }
   0xe   : > { %s677_s24 = smov [#allocation7]   ;;  %s518_s28 = scalar_lea.hbm %s940_s1, 2048 }
   0xf   : > { %s948_s20 = scalar_select %p743_p8, 1, 0 }
  0x10   : > { %p460_p9 = pneg %p743_p8  ;;  %s145_s25 = sshll.u32 %s677_s24, 4  ;;  %s758_s25 = int_to_ptr.vmem [resolvable:$true] %s145_s25 }
  0x11   : > { %p519_p12 = scmp.ne.s32.totalorder %s940_s1, %s518_s28  ;;  %p525_p5 = scmp.lt.u32.totalorder %s518_s28, %s940_s1 }
  0x12   : > { %p754_p11 = pnand %p460_p9, %p943_p1 }
  0x14   : > { %p520_p13 = pneg %p754_p11 }
  0x16   : > { %p521_p0 = pnand %p520_p13, %p519_p12 }
  0x18   : > { %p522_p3 = pneg %p521_p0 }
  0x1a   : > { %p527_p7 = pnand %p525_p5, %p522_p3 }
  0x1c   : > { %530 = shalt.err (!%p527_p7)
}
  0x1d   : > { %s531_s6 = scalar_lea.vmem %s747_s22, 2048  ;;  %p539_p2 = scmp.lt.s32.totalorder %s747_s22, %s747_s22 }
  0x1e   : > { %p532_p9 = scmp.ne.s32.totalorder %s747_s22, %s531_s6  ;;  %p540_p12 = scmp.lt.s32.totalorder %s531_s6, %s531_s6 }
  0x20   : > { %p534_p10 = pnand %p532_p9, %p520_p13  ;;  %p541_p0 = por %p540_p12, %p539_p2 }
  0x22   : > { %p535_p1 = pneg %p534_p10 }
  0x24   : > { %p542_p6 = pnand %p541_p0, %p535_p1 }
  0x26   : > { %545 = shalt.err (!%p542_p6)
}
  0x27   : > { %s678_s7 = smov 256   ;;  %s679_s8 = smov 16  }
  0x28   : > { %463 = dma.hbm_to_vmem [thread:$0]  (!%p754_p11), %s940_s1, 2048, %s747_s22, [#allocation6], %s678_s7, %s678_s7, %s679_s8  }
  0x29   : > { %s546_s21 = scalar_lea.hbm %s941_s2, 256  ;;  %s551_s29 = scalar_lea.hbm %s941_s2, 2048 }
  0x2a   : > { %p547_p2 = scmp.ne.s32.totalorder %s941_s2, %s546_s21  ;;  %p552_p10 = scmp.lt.u32.totalorder %s551_s29, %s546_s21 }
  0x2b   : > { %p553_p3 = scmp.lt.u32.totalorder %s546_s21, %s941_s2 }
  0x2c   : > { %p549_p1 = pnand %p547_p2, %p520_p13 }
  0x2d   : > { %p554_p5 = por %p553_p3, %p552_p10 }
  0x2e   : > { %p550_p6 = pneg %p549_p1 }
  0x30   : > { %p555_p7 = pnand %p554_p5, %p550_p6 }
  0x32   : > { %558 = shalt.err (!%p555_p7)
}
  0x33   : > { %s559_s22 = scalar_lea.vmem %s758_s25, 256  ;;  %p567_p2 = scmp.lt.s32.totalorder %s758_s25, %s758_s25 }
  0x34   : > { %p560_p9 = scmp.ne.s32.totalorder %s758_s25, %s559_s22  ;;  %p568_p1 = scmp.lt.s32.totalorder %s559_s22, %s559_s22 }
  0x36   : > { %p562_p12 = pnand %p560_p9, %p520_p13  ;;  %p569_p4 = por %p568_p1, %p567_p2 }
  0x38   : > { %p563_p0 = pneg %p562_p12 }
  0x3a   : > { %p570_p8 = pnand %p569_p4, %p563_p0 }
  0x3c   : > { %573 = shalt.err (!%p570_p8)
}
  0x3d   : > { %466 = dma.hbm_to_vmem [thread:$0]  (!%p754_p11), %s941_s2, 256, %s758_s25, [#allocation6]  }
  0x3e   : > { %s816_s7 = sadd.s32 1, %s674_s15   ;;  %s27_s23 = sadd.s32 1, %s670_s14 }
  0x3f   : > { %s24_s8 = ssub.s32 %s674_s15, %s816_s7  ;;  %p34_p4 = scmp.ne.s32.totalorder %s670_s14, %s666_s13 }
  0x40   : > { %p25_p8 = scmp.eq.s32.totalorder %s24_s8, 0  ;;  %p35_p13 = scmp.eq.s32.totalorder %s674_s15, 0 }
  0x41   : > { %p950_p6 = scmp.eq.s32.totalorder %s724_s16, 1  ;;  %p477_p3 = scmp.lt.s32.totalorder %s674_s15, 2 }
  0x42   : > { %s832_s10 = scalar_select %p25_p8, %s670_s14, %s27_s23  }
  0x43   : > { %p826_p10 = por %p950_p6, %p34_p4  ;;  %p36_p5 = por %p35_p13, %p34_p4 }
  0x44   : > { %s156_s11 = sand.u32 1, %s670_s14   ;;  %s419_s25 = sshll.u32 %s674_s15, 7 }
  0x45   : > { %s418_s17 = sshll.u32 %s156_s11, 3  ;;  %s839_s26 = scalar_lea.hbm %s939_s0, %s419_s25 }
  0x46   : > { %s160_s27 = scalar_lea.vmem [#allocation2], %s418_s17  ;;  %p843_p11 = pnand %p477_p3, %p36_p5 }
  0x47   : > { %s167_s28 = sshll.u32 %s160_s27, 4  ;;  %s157_s30 = scalar_lea.sflag [#allocation3], %s156_s11  ;;  %s841_s28 = int_to_ptr.vmem [resolvable:$true] %s167_s28 }
  0x48   : > { %s574_s4 = scalar_lea.hbm %s839_s26, 128  ;;  %p576_p9 = pneg %p843_p11 }
  0x49   : > { %p575_p7 = scmp.ne.s32.totalorder %s839_s26, %s574_s4  ;;  %s579_s6 = scalar_lea.hbm %s939_s0, 256 }
  0x4a   : > { %p580_p2 = scmp.lt.u32.totalorder %s839_s26, %s939_s0  ;;  %p581_p1 = scmp.lt.u32.totalorder %s579_s6, %s574_s4 }
  0x4b   : > { %p577_p12 = pnand %p576_p9, %p575_p7  ;;  %p583_p8 = scmp.lt.u32.totalorder %s574_s4, %s839_s26 }
  0x4c   : > { %p582_p4 = por %p581_p1, %p580_p2 }
  0x4d   : > { %p578_p0 = pneg %p577_p12 }
  0x4e   : > { %p584_p13 = por %p583_p8, %p582_p4 }
  0x50   : > { %p585_p6 = pnand %p584_p13, %p578_p0 }
  0x52   : > { %588 = shalt.err (!%p585_p6)
}
  0x53   : > { %s589_s11 = scalar_lea.vmem %s841_s28, 128  ;;  %s680_s17 = smov [#allocation2]  }
  0x54   : > { %p590_p3 = scmp.ne.s32.totalorder %s841_s28, %s589_s11  ;;  %s594_s25 = sshll.u32 %s680_s17, 4  ;;  %s595_s25 = int_to_ptr.vmem [resolvable:$false] %s594_s25 }
  0x55   : > { %s596_s21 = scalar_lea.vmem %s595_s25, 256  ;;  %p597_p12 = scmp.lt.s32.totalorder %s841_s28, %s595_s25 }
  0x56   : > { %p592_p5 = pnand %p590_p3, %p576_p9  ;;  %p598_p2 = scmp.lt.s32.totalorder %s596_s21, %s589_s11 }
  0x58   : > { %p593_p7 = pneg %p592_p5  ;;  %p599_p1 = por %p598_p2, %p597_p12 }
  0x5a   : > { %p600_p4 = pnand %p599_p1, %p593_p7 }
  0x5c   : > { %603 = shalt.err (!%p600_p4)
}
  0x5d   : > { %470 = dma.hbm_to_vmem [thread:$0]  (!%p843_p11), %s839_s26, 128, %s841_s28, %s157_s30  }
  0x5e   : > { %p953_p0 = scmp.ne.s32.totalorder %s948_s20, 0 }
  0x5f   : > { %s875_s24 = sand.u32 (!%p953_p0), 1, %s666_s13   ;;  %p954_p9 = scmp.ne.s32.totalorder (!%p953_p0), %s946_s18, 0 }
  0x60   : > { %176 = sbr.rel (%p953_p0) target bundleno = 355 (0x163), region = 32  ;;  %s421_s27 = sshll.u32 (!%p953_p0), %s875_s24, 3 }
  0x61   : > { %s179_s4 = scalar_lea.sflag (!%p953_p0), [#allocation3], %s875_s24  ;;  %s879_s22 = scalar_lea.vmem (!%p953_p0), [#allocation2], %s421_s27 }
  0x67   : > { %649 = dma.done.wait (%p954_p9), %s179_s4, 128  }
  0x68   : > { %651 = vsyncadd (%p954_p9), %s179_s4, 4294967168  ;;  %p955_p11 = scmp.eq.s32.totalorder %s724_s16, 0 }
  0x6a   : > { %653 = dma.done.wait (%p955_p11), [#allocation6], 2304   ;;  %p956_p8 = pmov %p955_p11 }
  0x6b   : > { %v681_v0 = vmov 0.0   ;;  %v215_v1 = vld [vmem:[#allocation5 + $0x8] sm:$0xff]  ;;  %v217_v2 = vld [vmem:[#allocation5 + $0x18] sm:$0xff]  ;;  %v214_v3 = vld [vmem:[#allocation5] sm:$0xff]  ;;  %vm232_vm0 = vcmask 523264   ;;  %s424_s18 = sshll.u32 %s875_s24, 4 }
  0x6c   : > { %655 = vsyncadd (%p956_p8), [#allocation6], 4294964992  ;;  %300 = vmatprep.mubr.f32.mxu0 %v681_v0  ;;  %v432_v4 = vpack.c.bf16 %v217_v2, %v215_v1  ;;  %v216_v5 = vld [vmem:[#allocation5 + $0x10] sm:$0xff]  ;;  %v219_v6 = vld [vmem:[#allocation5 + $0x28] sm:$0xff]  ;;  %s431_s20 = sshll.u32 %s724_s16, 8  ;;  %s212_s26 = scalar_lea.vmem [#allocation8], %s424_s18 }
  0x6d   : > { %v221_v7 = vld [vmem:[#allocation5 + $0x38] sm:$0xff]  ;;  %v434_v8 = vpack.c.bf16 %v216_v5, %v214_v3  ;;  %v218_v10 = vld [vmem:[#allocation5 + $0x20] sm:$0xff]  ;;  %v220_v11 = vld [vmem:[#allocation5 + $0x30] sm:$0xff]  ;;  %s324_s28 = sshll.u32 %s212_s26, 4  ;;  %s895_s5 = scalar_lea.hbm %s942_s3, %s431_s20  ;;  %s897_s28 = int_to_ptr.vmem [resolvable:$true] %s324_s28 }
  0x6e   : > { %v436_v9 = vpack.c.bf16 %v221_v7, %v219_v6  ;;  %v223_v12 = vld [vmem:[#allocation5 + $0x48] sm:$0xff]  ;;  %433 = vmatprep.subr.bf16.mxu0 %v432_v4  ;;  %v225_v13 = vld [vmem:[#allocation5 + $0x58] sm:$0xff]  ;;  %v438_v14 = vpack.c.bf16 %v220_v11, %v218_v10  ;;  %v222_v16 = vld [vmem:[#allocation5 + $0x40] sm:$0xff]  ;;  %s310_s6 = scalar_lea.sflag [#allocation4], %s875_s24  ;;  %s604_s16 = scalar_lea.vmem %s897_s28, 256 }
  0x6f   : > { %435 = vmatpush1.bf16.msra.mxu0 %v434_v8  ;;  %v440_v15 = vpack.c.bf16 %v225_v13, %v223_v12  ;;  %v224_v17 = vld [vmem:[#allocation5 + $0x50] sm:$0xff]  ;;  %v227_v18 = vld [vmem:[#allocation5 + $0x68] sm:$0xff]  ;;  %v229_v19 = vld [vmem:[#allocation5 + $0x78] sm:$0xff]  ;;  %p605_p13 = scmp.ne.s32.totalorder %s897_s28, %s604_s16  ;;  %s682_s23 = smov [#allocation8]  }
  0x70   : > { %437 = vmatprep.subr.bf16.mxu0 %v436_v9  ;;  %v442_v20 = vpack.c.bf16 %v224_v17, %v222_v16  ;;  %v444_v21 = vpack.c.bf16 %v229_v19, %v227_v18  ;;  %v226_v22 = vld [vmem:[#allocation5 + $0x60] sm:$0xff]  ;;  %v228_v23 = vld [vmem:[#allocation5 + $0x70] sm:$0xff]  ;;  %v231_v27 = vld [vmem:[#allocation7 + $0x8] sm:$0xff]  ;;  %s608_s8 = sshll.u32 %s682_s23, 4  ;;  %s609_s8 = int_to_ptr.vmem [resolvable:$false] %s608_s8 }
  0x71   : > { %v446_v24 = vpack.c.bf16 %v228_v23, %v226_v22  ;;  %v213_v25 = vld [vmem:[%s879_s22] sm:$0xff]  ;;  %v230_v26 = vld [vmem:[#allocation7] sm:$0xff]  ;;  %p606_p6 = pnand %p605_p13, %p826_p10  ;;  %s610_s11 = scalar_lea.vmem %s609_s8, 512 }
  0x72   : > { %p611_p5 = scmp.lt.s32.totalorder %s897_s28, %s609_s8  ;;  %p612_p7 = scmp.lt.s32.totalorder %s610_s11, %s604_s16 }
  0x73   : > { %439 = vmatpush1.bf16.msra.mxu0 %v438_v14  ;;  %p607_p3 = pneg %p606_p6 }
  0x74   : > { %441 = vmatprep.subr.bf16.mxu0 %v440_v15  ;;  %p613_p12 = por %p612_p7, %p611_p5 }
  0x76   : > { %p614_p2 = pnand %p613_p12, %p607_p3 }
  0x77   : > { %443 = vmatpush1.bf16.msra.mxu0 %v442_v20 }
  0x78   : > { %445 = vmatprep.subr.bf16.mxu0 %v444_v21 }
  0x7b   : > { %447 = vmatpush1.bf16.msra.mxu0 %v446_v24 }
  0x7e   : > { %425 = vmatmul.mubr.msk.f32.vlgmr.msra.gmra.mrb[0].mxu0 %vm232_vm0, %v213_v25 }
 0x151   : > { %v302_v28 = vpop.f32.mrb[0].mxu0 }
 0x152   : > { %v303_v29 = vadd.f32 %v302_v28, %v230_v26  ;;  %v304_v30 = vpop.f32.mrb[1].mxu0 }
 0x153   : > { %v305_v31 = vadd.f32 %v304_v30, %v231_v27 }
 0x154   : > { %307 = vst [vmem:[%s212_s26] sm:$0xff] %v303_v29 }
 0x155   : > { %308 = vst [vmem:[%s212_s26 + $0x8] sm:$0xff] %v305_v31 }
 0x156   : > { %617 = shalt.err (!%p614_p2)
}
 0x157   : > { %s618_s17 = scalar_lea.hbm %s895_s5, 256  ;;  %s622_s24 = scalar_lea.hbm %s942_s3, 512 }
 0x158   : > { %p619_p1 = scmp.ne.s32.totalorder %s895_s5, %s618_s17  ;;  %p623_p9 = scmp.lt.u32.totalorder %s895_s5, %s942_s3 }
 0x159   : > { %p624_p11 = scmp.lt.u32.totalorder %s622_s24, %s618_s17  ;;  %p626_p13 = scmp.lt.u32.totalorder %s618_s17, %s895_s5 }
 0x15a   : > { %p620_p4 = pnand %p619_p1, %p826_p10 }
 0x15b   : > { %p625_p8 = por %p624_p11, %p623_p9 }
 0x15c   : > { %p621_p0 = pneg %p620_p4 }
 0x15d   : > { %p627_p6 = por %p626_p13, %p625_p8 }
 0x15f   : > { %p628_p3 = pnand %p627_p6, %p621_p0 }
 0x161   : > { %631 = shalt.err (!%p628_p3)
}
 0x162   : > { %458 = dma.vmem_to_hbm [thread:$0]  (%p826_p10), %s897_s28, 256, %s895_s5, %s310_s6  }
 0x163 PF: > { %s336_s22 = sand.u32 1, %s662_s12   ;;  %p957_p5 = scmp.ne.s32.totalorder %s947_s19, 0 }
 0x164   : > { %p958_p7 = scmp.ge.s32.totalorder %s674_s15, 2  ;;  %s337_s18 = scalar_lea.sflag [#allocation4], %s336_s22 }
 0x166   : > { %p472_p12 = pnand %p958_p7, %p957_p5 }
 0x168   : > { %657 = dma.done.wait (!%p472_p12), %s337_s18, 256  }
 0x169   : > { %659 = vsyncadd (!%p472_p12), %s337_s18, 4294967040  ;;  %p17_p2 = scmp.ge.s32.totalorder %s816_s7, 4   ;;  %s959_s12 = smov %s666_s13 }
 0x16a   : > { %s960_s13 = smov %s670_s14  ;;  %s961_s14 = smov %s832_s10 }
 0x16b   : > { %s962_s15 = smov %s816_s7  ;;  %19 = sbr.rel (!%p17_p2) target bundleno = 6 (0x6), region = 85 }
 0x172   :  { %342 = vsyncpa [#allocation3], 1 }
 0x173   :  { %344 = vsyncpa [#allocation3 + $0x1], 1 }
 0x174   :  { %345 = vsyncpa [#allocation6], 1 }
 0x175   :  { %346 = vsyncpa [#allocation4], 1 }
 0x176   :  { %348 = vsyncpa [#allocation4 + $0x1], 1 }

</bundles_post_ra>
